<compile_context>
chip_gen: v5e
topology: v5e:2x2
jax: 0.10.0
libtpu: 0.0.40
codegen_flags: <defaults>
</compile_context>

<pallas_src>
import functools

import jax
import jax.numpy as jnp
from jax import lax
from jax.experimental import pallas as pl
from jax.experimental.pallas import tpu as pltpu


def _round_up(x, m):
    return ((x + m - 1) // m) * m


def _lrba_kernel(q_ref, k_ref, wq_ref, wk_ref, wv_ref, b_ref, o_ref, *,
                 mxu_dtype, out_channels):
    # q_ref : (1, TR, d_q)   row tile (M*Lq rows folded) of the current batch b
    # k_ref : (1, Lk, d_k)   keys of b (same block across the row axis: no re-DMA)
    # w*_ref: (d_in, C_pad)  pre-transposed + lane-padded; 1/sqrt(C) folded in WQ
    # b_ref : (3, C_pad)     rows = [bq*scale, bk, bv] (f32)
    # o_ref : (1, TR, C)     unpadded channel dim (masked vst only when C < 128)
    Qt = q_ref[0].astype(mxu_dtype)                      # (TR, d_q)
    Kt = k_ref[0].astype(mxu_dtype)                      # (Lk, d_k)

    # Projections: MXU operands in mxu_dtype, f32 accumulation, f32 bias add.
    # k/v are recomputed per row tile (tiny) so both grid axes stay "parallel".
    q = jnp.dot(Qt, wq_ref[...], preferred_element_type=jnp.float32) + b_ref[0:1, :]
    k = jnp.dot(Kt, wk_ref[...], preferred_element_type=jnp.float32) + b_ref[1:2, :]
    v = jnp.dot(Kt, wv_ref[...], preferred_element_type=jnp.float32) + b_ref[2:3, :]

    # Bilinear scores (TR, Lk): contract the channel dim of q and k directly —
    # no transpose materialized; the softmax scale is already in WQ/bq.
    scores = lax.dot_general(
        q.astype(mxu_dtype), k.astype(mxu_dtype),
        dimension_numbers=(((1,), (1,)), ((), ())),
        preferred_element_type=jnp.float32)

    # Numerically stable softmax; normalize AFTER the PV matmul so the row-scale
    # is a (TR, C_pad) multiply instead of (TR, Lk); reciprocal rides the EUP.
    m_max = jnp.max(scores, axis=-1, keepdims=True)
    e = jnp.exp(scores - m_max)
    denom = jnp.sum(e, axis=-1, keepdims=True)
    pv = jnp.dot(e.astype(mxu_dtype), v.astype(mxu_dtype),
                 preferred_element_type=jnp.float32)
    out = pv * pl.reciprocal(denom, approx=True)

    o_ref[0] = out[:, :out_channels].astype(o_ref.dtype)


def low_rank_bilinear_attention(Q, K, params, *, compute_dtype=jnp.bfloat16,
                                row_tile=256):
    """Fused Pallas implementation of LowRankBilinearAttention.forward.

    Q: (B, M, Lq, d_q)   K: (B, Lk, d_k)   (module requires d_v == d_k: V = K.clone())
    params: wq (C, d_q), bq (C,), wk (C, d_k), bk (C,), wv (C, d_v), bv (C,)
    compute_dtype: dtype fed to the MXU (bf16 default; float32 for parity tests).
    returns: (B, M, Lq, C) float32
    """
    B, M, Lq, d_q = Q.shape
    _, Lk, d_k = K.shape
    C = params["wq"].shape[0]
    assert params["wv"].shape[1] == d_k, "module requires d_v == d_k (V = K.clone())"

    R = M * Lq
    TR = min(_round_up(R, 8), _round_up(row_tile, 8))    # row tile, multiple of 8
    n_r = -(-R // TR)
    R_pad = n_r * TR
    C_pad = _round_up(C, 128)
    scale = 1.0 / (float(C) ** 0.5)                      # q.size(-1) == channel

    # Pre-transpose weights to (d_in, C), fold 1/sqrt(C) into WQ, lane-pad channel.
    def prep_w(w, s=1.0):
        wt = (jnp.asarray(w, jnp.float32).T * s).astype(compute_dtype)
        return jnp.pad(wt, ((0, 0), (0, C_pad - C)))
    wq_t = prep_w(params["wq"], scale)
    wk_t = prep_w(params["wk"])
    wv_t = prep_w(params["wv"])

    # Biases stacked into one lane-padded f32 tile; bq carries the scale too.
    b_all = jnp.stack([jnp.asarray(params["bq"], jnp.float32) * scale,
                       jnp.asarray(params["bk"], jnp.float32),
                       jnp.asarray(params["bv"], jnp.float32)])
    b_all = jnp.pad(b_all, ((0, 0), (0, C_pad - C)))     # (3, C_pad)

    # Fold M into the row dim (free reshape); NO dtype cast here — activations
    # keep their stored dtype in HBM and are cast inside the kernel.
    Q_r = Q.reshape(B, R, d_q)
    if R_pad != R:
        Q_r = jnp.pad(Q_r, ((0, 0), (0, R_pad - R), (0, 0)))   # exact: sliced off

    kernel = functools.partial(_lrba_kernel, mxu_dtype=compute_dtype,
                               out_channels=C)

    w_item = jnp.dtype(compute_dtype).itemsize
    # Advisory cost estimate for XLA's scheduler.
    flops = 2 * B * (R_pad * d_q * C_pad
                     + n_r * 2 * Lk * d_k * C_pad
                     + 2 * R_pad * Lk * C_pad)
    bytes_accessed = (Q_r.size * Q_r.dtype.itemsize
                      + K.size * K.dtype.itemsize
                      + (wq_t.size + wk_t.size + wv_t.size) * w_item
                      + b_all.size * 4
                      + B * R_pad * C * 4)
    cost = pl.CostEstimate(flops=int(flops),
                           transcendentals=int(B * R_pad * (Lk + 1)),
                           bytes_accessed=int(bytes_accessed))

    # Explicit scoped-VMEM budget (default scoped limit is only 16 MiB on v5e).
    step_bytes = (
        2 * TR * d_q * Q_r.dtype.itemsize            # Q block (double-buffered)
        + 2 * Lk * d_k * K.dtype.itemsize            # K block
        + 2 * TR * C * 4                             # out block
        + 2 * ((d_q + 2 * d_k) * C_pad * w_item + 3 * C_pad * 4)  # weights/bias
        + (TR + 2 * Lk) * C_pad * 4                  # q/k/v intermediates
        + 3 * TR * Lk * 4                            # scores / e temporaries
        + 2 * TR * C_pad * 4)                        # pv / out temporaries
    vmem_limit = int(min(max(32 << 20, 2 * step_bytes), 60 << 20))

    out = pl.pallas_call(
        kernel,
        out_shape=jax.ShapeDtypeStruct((B, R_pad, C), jnp.float32),
        grid_spec=pltpu.PrefetchScalarGridSpec(
            num_scalar_prefetch=0,
            grid=(B, n_r),
            in_specs=[
                pl.BlockSpec((1, TR, d_q), lambda b, r: (b, r, 0)),   # Q row tile
                pl.BlockSpec((1, Lk, d_k), lambda b, r: (b, 0, 0)),   # K of b
                pl.BlockSpec((d_q, C_pad), lambda b, r: (0, 0)),      # WQ^T (scaled)
                pl.BlockSpec((d_k, C_pad), lambda b, r: (0, 0)),      # WK^T
                pl.BlockSpec((d_k, C_pad), lambda b, r: (0, 0)),      # WV^T
                pl.BlockSpec((3, C_pad), lambda b, r: (0, 0)),        # biases
            ],
            out_specs=pl.BlockSpec((1, TR, C), lambda b, r: (b, r, 0)),
        ),
        compiler_params=pltpu.CompilerParams(
            dimension_semantics=("parallel", "parallel"),
            vmem_limit_bytes=vmem_limit),
        cost_estimate=cost,
    )(Q_r, K, wq_t, wk_t, wv_t, b_all)

    # Drop row padding (exact) and restore the (B, M, Lq, C) layout.
    return out[:, :R, :].reshape(B, M, Lq, C)


def reference(Q, K, params):
    """Pure-JAX reference mirroring the PyTorch forward exactly."""
    C = params["wq"].shape[0]
    Kx = K[:, None]                                    # K.unsqueeze(1)
    Vx = Kx                                            # V = K.clone()
    q = jnp.einsum("bmld,cd->bmlc", Q, params["wq"]) + params["bq"]
    k = jnp.einsum("bxld,cd->bxlc", Kx, params["wk"]) + params["bk"]
    v = jnp.einsum("bxld,cd->bxlc", Vx, params["wv"]) + params["bv"]
    scores = jnp.einsum("bmqc,bxkc->bmqk", q, k) / (C ** 0.5)
    probs = jax.nn.softmax(scores, axis=-1)
    return jnp.einsum("bmqk,bxkc->bmqc", probs, v)


if __name__ == "__main__":
    # Small, module-consistent shapes (d_v == d_k required by the module itself).
    B, M, Lq, Lk = 2, 2, 8, 16
    d_q, d_k, d_v, channel = 32, 64, 64, 32

    key = jax.random.PRNGKey(0)
    ks = jax.random.split(key, 8)

    params = {
        "wq": 0.05 * jax.random.normal(ks[0], (channel, d_q), jnp.float32),
        "bq": 0.05 * jax.random.normal(ks[1], (channel,), jnp.float32),
        "wk": 0.05 * jax.random.normal(ks[2], (channel, d_k), jnp.float32),
        "bk": 0.05 * jax.random.normal(ks[3], (channel,), jnp.float32),
        "wv": 0.05 * jax.random.normal(ks[4], (channel, d_v), jnp.float32),
        "bv": 0.05 * jax.random.normal(ks[5], (channel,), jnp.float32),
    }

    Q = jax.random.normal(ks[6], (B, M, Lq, d_q), jnp.float32)
    K = jax.random.normal(ks[7], (B, Lk, d_k), jnp.float32)

    ref = jax.block_until_ready(reference(Q, K, params))

    # f32 MXU path — parity check (tolerance covers the approx EUP reciprocal).
    out_f32 = jax.block_until_ready(
        low_rank_bilinear_attention(Q, K, params, compute_dtype=jnp.float32))
    assert out_f32.shape == (B, M, Lq, channel)
    assert jnp.allclose(out_f32, ref, atol=2e-3, rtol=2e-3), "f32 kernel mismatch"

    # Default bf16 MXU path (fast path on v6e/v7x); f32 accumulation + softmax.
    out_bf16 = jax.block_until_ready(low_rank_bilinear_attention(Q, K, params))
    assert out_bf16.shape == (B, M, Lq, channel)
    assert bool(jnp.all(jnp.isfinite(out_bf16)))
    assert jnp.allclose(out_bf16, ref, atol=0.1, rtol=0.1), "bf16 kernel mismatch"

    print("KERNEL_OK")
</pallas_src>

<mosaic_0001>
module attributes {stable_mosaic.version = 11 : i64} {
  func.func @_lrba_kernel(%arg0: i32, %arg1: i32, %arg2: memref<1x16x32xf32, #tpu.memory_space<vmem>>, %arg3: memref<1x16x64xf32, #tpu.memory_space<vmem>>, %arg4: memref<32x128xf32, #tpu.memory_space<vmem>>, %arg5: memref<64x128xf32, #tpu.memory_space<vmem>>, %arg6: memref<64x128xf32, #tpu.memory_space<vmem>>, %arg7: memref<3x128xf32, #tpu.memory_space<vmem>>, %arg8: memref<1x16x32xf32, #tpu.memory_space<vmem>>) attributes {dimension_semantics = [#tpu.dimension_semantics<parallel>, #tpu.dimension_semantics<parallel>], iteration_bounds = array<i64: 2, 1>, scalar_prefetch = 0 : i64, scratch_operands = 0 : i64, tpu.core_type = #tpu.core_type<tc>, window_params = [{transform_indices = @transform_0, window_bounds = array<i64: 1, 16, 32>}, {transform_indices = @transform_1, window_bounds = array<i64: 1, 16, 64>}, {pipeline_mode = #tpu.pipeline_mode<synchronous>, transform_indices = @transform_2, window_bounds = array<i64: 32, 128>}, {pipeline_mode = #tpu.pipeline_mode<synchronous>, transform_indices = @transform_3, window_bounds = array<i64: 64, 128>}, {pipeline_mode = #tpu.pipeline_mode<synchronous>, transform_indices = @transform_4, window_bounds = array<i64: 64, 128>}, {pipeline_mode = #tpu.pipeline_mode<synchronous>, transform_indices = @transform_5, window_bounds = array<i64: 3, 128>}, {transform_indices = @transform_6, window_bounds = array<i64: 1, 16, 32>}]} {
    %c0 = arith.constant 0 : index
    %c0_0 = arith.constant 0 : index
    %c0_1 = arith.constant 0 : index
    %0 = vector.load %arg2[%c0, %c0_0, %c0_1] : memref<1x16x32xf32, #tpu.memory_space<vmem>>, vector<1x16x32xf32>
    %1 = vector.shape_cast %0 : vector<1x16x32xf32> to vector<16x32xf32>
    %c0_2 = arith.constant 0 : index
    %c0_3 = arith.constant 0 : index
    %c0_4 = arith.constant 0 : index
    %2 = vector.load %arg3[%c0_2, %c0_3, %c0_4] : memref<1x16x64xf32, #tpu.memory_space<vmem>>, vector<1x16x64xf32>
    %3 = vector.shape_cast %2 : vector<1x16x64xf32> to vector<16x64xf32>
    %c0_5 = arith.constant 0 : index
    %c0_6 = arith.constant 0 : index
    %4 = vector.load %arg4[%c0_5, %c0_6] : memref<32x128xf32, #tpu.memory_space<vmem>>, vector<32x128xf32>
    %cst = arith.constant dense<0.000000e+00> : vector<16x128xf32>
    %5 = tpu.matmul %1, %4, %cst {dimension_numbers = #tpu.dot_dimension_numbers<[1], [0], [0], [1], [0, 0, 1, 1], [], []>} : vector<16x32xf32>, vector<32x128xf32>, vector<16x128xf32> -> vector<16x128xf32>
    %c0_7 = arith.constant 0 : index
    %c0_8 = arith.constant 0 : index
    %6 = vector.load %arg7[%c0_7, %c0_8] : memref<3x128xf32, #tpu.memory_space<vmem>>, vector<1x128xf32>
    %7 = vector.broadcast %6 : vector<1x128xf32> to vector<16x128xf32>
    %8 = arith.addf %5, %7 : vector<16x128xf32>
    %c0_9 = arith.constant 0 : index
    %c0_10 = arith.constant 0 : index
    %9 = vector.load %arg5[%c0_9, %c0_10] : memref<64x128xf32, #tpu.memory_space<vmem>>, vector<64x128xf32>
    %cst_11 = arith.constant dense<0.000000e+00> : vector<16x128xf32>
    %10 = tpu.matmul %3, %9, %cst_11 {dimension_numbers = #tpu.dot_dimension_numbers<[1], [0], [0], [1], [0, 0, 1, 1], [], []>} : vector<16x64xf32>, vector<64x128xf32>, vector<16x128xf32> -> vector<16x128xf32>
    %c1 = arith.constant 1 : index
    %c0_12 = arith.constant 0 : index
    %11 = vector.load %arg7[%c1, %c0_12] : memref<3x128xf32, #tpu.memory_space<vmem>>, vector<1x128xf32>
    %12 = vector.broadcast %11 : vector<1x128xf32> to vector<16x128xf32>
    %13 = arith.addf %10, %12 : vector<16x128xf32>
    %c0_13 = arith.constant 0 : index
    %c0_14 = arith.constant 0 : index
    %14 = vector.load %arg6[%c0_13, %c0_14] : memref<64x128xf32, #tpu.memory_space<vmem>>, vector<64x128xf32>
    %cst_15 = arith.constant dense<0.000000e+00> : vector<16x128xf32>
    %15 = tpu.matmul %3, %14, %cst_15 {dimension_numbers = #tpu.dot_dimension_numbers<[1], [0], [0], [1], [0, 0, 1, 1], [], []>} : vector<16x64xf32>, vector<64x128xf32>, vector<16x128xf32> -> vector<16x128xf32>
    %c2 = arith.constant 2 : index
    %c0_16 = arith.constant 0 : index
    %16 = vector.load %arg7[%c2, %c0_16] : memref<3x128xf32, #tpu.memory_space<vmem>>, vector<1x128xf32>
    %17 = vector.broadcast %16 : vector<1x128xf32> to vector<16x128xf32>
    %18 = arith.addf %15, %17 : vector<16x128xf32>
    %cst_17 = arith.constant dense<0.000000e+00> : vector<16x16xf32>
    %19 = tpu.matmul %8, %13, %cst_17 {dimension_numbers = #tpu.dot_dimension_numbers<[1], [1], [0], [0], [0, 0, 1, 0], [], []>} : vector<16x128xf32>, vector<16x128xf32>, vector<16x16xf32> -> vector<16x16xf32>
    %cst_18 = arith.constant dense<0xFF800000> : vector<16xf32>
    %20 = vector.multi_reduction <maximumf>, %19, %cst_18 [1] : vector<16x16xf32> to vector<16xf32>
    %21 = vector.shape_cast %20 : vector<16xf32> to vector<16x1xf32>
    %22 = vector.broadcast %21 : vector<16x1xf32> to vector<16x16xf32>
    %23 = arith.subf %19, %22 : vector<16x16xf32>
    %24 = math.exp %23 : vector<16x16xf32>
    %cst_19 = arith.constant dense<0.000000e+00> : vector<16xf32>
    %25 = vector.multi_reduction <add>, %24, %cst_19 [1] : vector<16x16xf32> to vector<16xf32>
    %26 = vector.shape_cast %25 : vector<16xf32> to vector<16x1xf32>
    %cst_20 = arith.constant dense<0.000000e+00> : vector<16x128xf32>
    %27 = tpu.matmul %24, %18, %cst_20 {dimension_numbers = #tpu.dot_dimension_numbers<[1], [0], [0], [1], [0, 0, 1, 1], [], []>} : vector<16x16xf32>, vector<16x128xf32>, vector<16x128xf32> -> vector<16x128xf32>
    %28 = tpu.reciprocal %26 {approx = true} : vector<16x1xf32> -> vector<16x1xf32>
    %29 = vector.broadcast %28 : vector<16x1xf32> to vector<16x128xf32>
    %30 = arith.mulf %27, %29 : vector<16x128xf32>
    %31 = vector.extract_strided_slice %30 {offsets = [0, 0], sizes = [16, 32], strides = [1, 1]} : vector<16x128xf32> to vector<16x32xf32>
    %c0_21 = arith.constant 0 : index
    %c0_22 = arith.constant 0 : index
    %c0_23 = arith.constant 0 : index
    %32 = vector.load %arg8[%c0_21, %c0_22, %c0_23] : memref<1x16x32xf32, #tpu.memory_space<vmem>>, vector<1x16x32xf32>
    %33 = vector.shape_cast %32 : vector<1x16x32xf32> to vector<16x32xf32>
    %34 = vector.shape_cast %31 : vector<16x32xf32> to vector<1x16x32xf32>
    tpu.vector_store %arg8[%c0_21, %c0_22, %c0_23], %34 {strides = array<i32>} : memref<1x16x32xf32, #tpu.memory_space<vmem>>, vector<1x16x32xf32>,
    return
  }
  func.func @transform_0(%arg0: i32, %arg1: i32) -> (i32, i32, i32) {
    %c0_i32 = arith.constant 0 : i32
    %c0_i32_0 = arith.constant 0 : i32
    return %arg0, %arg1, %c0_i32 : i32, i32, i32
  }
  func.func @transform_1(%arg0: i32, %arg1: i32) -> (i32, i32, i32) {
    %c0_i32 = arith.constant 0 : i32
    %c0_i32_0 = arith.constant 0 : i32
    %c0_i32_1 = arith.constant 0 : i32
    return %arg0, %c0_i32, %c0_i32_0 : i32, i32, i32
  }
  func.func @transform_2(%arg0: i32, %arg1: i32) -> (i32, i32) {
    %c0_i32 = arith.constant 0 : i32
    %c0_i32_0 = arith.constant 0 : i32
    %c0_i32_1 = arith.constant 0 : i32
    return %c0_i32, %c0_i32_0 : i32, i32
  }
  func.func @transform_3(%arg0: i32, %arg1: i32) -> (i32, i32) {
    %c0_i32 = arith.constant 0 : i32
    %c0_i32_0 = arith.constant 0 : i32
    %c0_i32_1 = arith.constant 0 : i32
    return %c0_i32, %c0_i32_0 : i32, i32
  }
  func.func @transform_4(%arg0: i32, %arg1: i32) -> (i32, i32) {
    %c0_i32 = arith.constant 0 : i32
    %c0_i32_0 = arith.constant 0 : i32
    %c0_i32_1 = arith.constant 0 : i32
    return %c0_i32, %c0_i32_0 : i32, i32
  }
  func.func @transform_5(%arg0: i32, %arg1: i32) -> (i32, i32) {
    %c0_i32 = arith.constant 0 : i32
    %c0_i32_0 = arith.constant 0 : i32
    %c0_i32_1 = arith.constant 0 : i32
    return %c0_i32, %c0_i32_0 : i32, i32
  }
  func.func @transform_6(%arg0: i32, %arg1: i32) -> (i32, i32, i32) {
    %c0_i32 = arith.constant 0 : i32
    %c0_i32_0 = arith.constant 0 : i32
    return %arg0, %arg1, %c0_i32 : i32, i32, i32
  }
}

</mosaic_0001>

<bundles_post_ra>
// kernel: tpu_custom_call.1
= control target key start
LH: loop header
LB: loop body
LE: loop exit
PB: predicated region body
PF: predicated region fallthrough
CT: control target
= control target key end

     0   :  { %s1395_s0 = inlined_call_operand.hbm [shape: f32[2,16,32], index: 0, kind: input, shape index: {}]   ;;  %s1396_s1 = inlined_call_operand.hbm [shape: f32[2,16,64], index: 1, kind: input, shape index: {}]   ;;  %s1397_s2 = inlined_call_operand.hbm [shape: f32[32,128], index: 2, kind: input, shape index: {}]   ;;  %s1398_s3 = inlined_call_operand.hbm [shape: f32[64,128], index: 3, kind: input, shape index: {}]   ;;  %s1399_s4 = inlined_call_operand.hbm [shape: f32[64,128], index: 4, kind: input, shape index: {}]   ;;  %s1400_s5 = inlined_call_operand.vmem [shape: f32[3,128], index: 5, kind: input, shape index: {}]   ;;  %s1401_s6 = inlined_call_operand.hbm [shape: f32[2,16,32], index: 6, kind: output, shape index: {}]  }
   0x1   :  { %1408 = sst [smem:[#allocation20_spill]] %s1397_s2 }
   0x2   :  { %1409 = sst [smem:[#allocation21_spill]] %s1398_s3 }
   0x3   :  { %1410 = sst [smem:[#allocation22_spill]] %s1399_s4 }
   0x4   :  { %11 = vsyncpa [#allocation3], 0 }
   0x5   :  { %13 = vsyncpa [#allocation3 + $0x1], 0 }
   0x6   :  { %14 = vsyncpa [#allocation6], 0 }
   0x7   :  { %16 = vsyncpa [#allocation6 + $0x1], 0 }
   0x8   :  { %17 = vsyncpa [#allocation9], 0 }
   0x9   :  { %18 = vsyncpa [#allocation4], 0 }
   0xa   :  { %20 = vsyncpa [#allocation4 + $0x1], 0  ;;  %s1170_s21 = smov 0   ;;  %s1172_s22 = smov 0  }
   0xb   :  { %s1174_s23 = smov 0   ;;  %s1176_s24 = smov 0  }
   0xc   :  { %s1178_s25 = smov 0   ;;  %s1180_s26 = smov 0  }
   0xd LB: > { %1411 = sst [smem:[#allocation17_spill]] %s1122_s25  ;;  %s1201_s27 = sadd.s32 4294967295, %s1126_s26   ;;  %s1126_s26 = sphi %s1180_s26, %s26_s26   ;;  %s1122_s25 = sphi %s1178_s25, %s1427_s25   ;;  %s1118_s24 = sphi %s1176_s24, %s1426_s24   ;;  %s1114_s23 = sphi %s1174_s23, %s1430_s23   ;;  %s1110_s22 = sphi %s1172_s22, %s1429_s22   ;;  %s1106_s21 = sphi %s1170_s21, %s1428_s21  }
   0xe   : > { %s730_s28 = sadd.s32 4294967294, %s1126_s26   ;;  %p60_p0 = scmp.ne.s32.totalorder %s1110_s22, %s1106_s21 }
   0xf   : > { %p61_p1 = scmp.eq.s32.totalorder %s1201_s27, 0  ;;  %p196_p2 = scmp.eq.s32.totalorder %s1201_s27, 1 }
  0x10   : > { %p202_p3 = scmp.eq.s32.totalorder %s730_s28, 1  ;;  %p731_p5 = scmp.ge.s32.totalorder %s1126_s26, 1 }
  0x11   : > { %p1210_p4 = por %p61_p1, %p60_p0  ;;  %p209_p7 = scmp.lt.s32.totalorder %s1126_s26, 3 }
  0x12   : > { %p1215_p6 = por %p202_p3, %p60_p0  ;;  %s1414_s2 = sld [smem:[#allocation20_spill]] }
  0x13   : > { %p1223_p8 = pnand %p731_p5, %p209_p7  ;;  %s1128_s11 = smov [#allocation7]  }
  0x14   : > { %s222_s12 = sshll.u32 %s1128_s11, 4  ;;  %p735_p11 = scmp.ge.s32.totalorder %s1126_s26, 2  ;;  %s223_s12 = int_to_ptr.vmem [resolvable:$true] %s222_s12 }
  0x15   : > { %p787_p9 = pneg %p1223_p8  ;;  %s1417_s3 = sld [smem:[#allocation21_spill]] }
  0x16   : > { %s1402_s17 = smov 128   ;;  %s1404_s18 = smov 8  }
  0x17   : > { %p1231_p10 = pnand %p787_p9, %p61_p1  ;;  %s1131_s19 = smov [#allocation8]  }
  0x18   : > { %s220_s9 = sshll.u32 %s1414_s2, 4  ;;  %s236_s20 = sshll.u32 %s1131_s19, 4  ;;  %s221_s9 = int_to_ptr.hbm [resolvable:$true] %s220_s9  ;;  %s237_s20 = int_to_ptr.vmem [resolvable:$true] %s236_s20 }
  0x19   : > { %790 = dma.hbm_to_vmem [thread:$0]  (!%p1231_p10), %s221_s9, 512, %s223_s12, [#allocation6], %s1402_s17, %s1402_s17, %s1404_s18  }
  0x1a   : > { %s1418_s4 = sld [smem:[#allocation22_spill]]  ;;  %s1132_s11 = smov [#allocation10]  }
  0x1b   : > { %s234_s16 = sshll.u32 %s1417_s3, 4  ;;  %s250_s14 = sshll.u32 %s1132_s11, 4  ;;  %s235_s16 = int_to_ptr.hbm [resolvable:$true] %s234_s16  ;;  %s251_s14 = int_to_ptr.vmem [resolvable:$true] %s250_s14 }
  0x1c   : > { %793 = dma.hbm_to_vmem [thread:$0]  (!%p1231_p10), %s235_s16, 1024, %s237_s20, [#allocation9], %s1402_s17, %s1402_s17, %s1404_s18  }
  0x1d   : > { %s38_s9 = sadd.s32 1, %s1122_s25  ;;  %s47_s12 = sadd.s32 1, %s1114_s23 }
  0x1e   : > { %p40_p12 = scmp.ge.s32.totalorder %s38_s9, 2  ;;  %p54_p13 = scmp.ne.s32.totalorder %s1114_s23, %s1110_s22 }
  0x1f   : > { %p55_p0 = scmp.eq.s32.totalorder %s1126_s26, 0  ;;  %p811_p7 = scmp.lt.s32.totalorder %s1126_s26, 2 }
  0x20   : > { %s248_s8 = sshll.u32 %s1418_s4, 4  ;;  %s1432_s9 = smov (%p40_p12, %s38_s9), 0  ;;  %s249_s8 = int_to_ptr.hbm [resolvable:$true] %s248_s8 }
  0x21   : > { %796 = dma.hbm_to_vmem [thread:$0]  (!%p1231_p10), %s249_s8, 1024, %s251_s14, [#allocation9], %s1402_s17, %s1402_s17, %s1404_s18  }
  0x22   : > { %1419 = sst [smem:[#allocation18_spill]] %s1432_s9  ;;  %p1264_p3 = por %p55_p0, %p54_p13 }
  0x23   : > { %p1270_p5 = por %p196_p2, %p54_p13  ;;  %s42_s16 = ssub.s32 %s1122_s25, %s1432_s9 }
  0x24   : > { %p45_p9 = scmp.eq.s32.totalorder %s42_s16, 0  ;;  %s267_s19 = sand.u32 1, %s1114_s23  }
  0x25   : > { %s736_s20 = sshll.u32 %s267_s19, 4  ;;  %s762_s7 = sshll.u32 %s1122_s25, 4 }
  0x26   : > { %s1279_s28 = scalar_select %p45_p9, %s1114_s23, %s47_s12  }
  0x27   : > { %s278_s14 = scalar_lea.hbm %s1395_s0, %s762_s7  ;;  %s271_s17 = scalar_lea.vmem [#allocation2], %s736_s20 }
  0x28   : > { %1422 = sst [smem:[#allocation19_spill]] %s1279_s28  ;;  %s281_s18 = sshll.u32 %s271_s17, 4  ;;  %s282_s18 = int_to_ptr.vmem [resolvable:$true] %s281_s18 }
  0x29   : > { %s279_s2 = sshll.u32 %s278_s14, 4  ;;  %p798_p2 = pnand %p811_p7, %p1264_p3  ;;  %s280_s2 = int_to_ptr.hbm [resolvable:$true] %s279_s2 }
  0x2a   : > { %s300_s16 = scalar_lea.hbm %s1396_s1, %s762_s7  ;;  %s268_s12 = scalar_lea.sflag [#allocation3], %s267_s19 }
  0x2b   : > { %s301_s9 = sshll.u32 %s300_s16, 4  ;;  %s1423_s28 = smov 8   ;;  %s302_s9 = int_to_ptr.hbm [resolvable:$true] %s301_s9 }
  0x2c   : > { %s1424_s25 = smov 128   ;;  %s295_s8 = scalar_lea.vmem [#allocation5], %s736_s20 }
  0x2d   : > { %800 = dma.hbm_to_vmem [thread:$0]  (!%p798_p2), %s280_s2, 256, %s282_s18, %s268_s12, %s1424_s25, %s1424_s25, %s1423_s28  }
  0x2e   : > { %s303_s11 = sshll.u32 %s295_s8, 4  ;;  %s291_s17 = sand.u32 1, %s1126_s26   ;;  %s304_s11 = int_to_ptr.vmem [resolvable:$true] %s303_s11 }
  0x2f   : > { %s292_s14 = scalar_lea.sflag [#allocation6], %s291_s17  ;;  %315 = sbr.rel (%p1223_p8) target bundleno = 619 (0x26b), region = 44 }
  0x30   : > { %803 = dma.hbm_to_vmem [thread:$0]  (!%p798_p2), %s302_s9, 256, %s304_s11, %s292_s14, %s1424_s25, %s1424_s25, %s1423_s28  }
  0x31   : > { %s1300_s3 = sand.u32 (!%p1223_p8), 1, %s1110_s22  }
  0x32   : > { %s1303_s2 = sshll.u32 (!%p1223_p8), %s1300_s3, 4  ;;  %s318_s4 = scalar_lea.sflag (!%p1223_p8), [#allocation3], %s1300_s3 }
  0x33   : > { %s321_s18 = scalar_lea.vmem (!%p1223_p8), [#allocation2], %s1303_s2 }
  0x34   : > { %1085 = dma.done.wait (%p1210_p4), %s318_s4, 256  }
  0x35   : > { %1087 = vsyncadd (%p1210_p4), %s318_s4, 4294967040  ;;  %s327_s25 = sand.u32 1, %s1201_s27   ;;  %s331_s9 = scalar_lea.vmem [#allocation5], %s1303_s2 }
  0x36   : > { %s328_s10 = scalar_lea.sflag [#allocation6], %s327_s25 }
  0x37   : > { %1089 = dma.done.wait (%p1210_p4), %s328_s10, 256  }
  0x38   : > { %1091 = vsyncadd (%p1210_p4), %s328_s10, 4294967040 }
  0x39   : > { %1093 = dma.done.wait (%p61_p1), [#allocation6], 512  }
  0x3a   : > { %1095 = vsyncadd (%p61_p1), [#allocation6], 4294966784 }
  0x3b   : > { %1097 = dma.done.wait (%p61_p1), [#allocation9], 2048  }
  0x3c   : > { %1099 = vsyncadd (%p61_p1), [#allocation9], 4294965248  ;;  %v430_v0 = vld [vmem:[#allocation8 + $0x38] sm:$0xff]  ;;  %v429_v1 = vld [vmem:[#allocation8 + $0x30] sm:$0xff]  ;;  %vm393_vm0 = vcmask 261120   ;;  %vm433_vm1 = vcmask 523264  }
  0x3d   : > { %448 = vmatpush.msra.mxu1 %v430_v0  ;;  %v428_v2 = vld [vmem:[#allocation8 + $0x28] sm:$0xff]  ;;  %v390_v3 = vld [vmem:[#allocation7 + $0x18] sm:$0xff]  ;;  %v389_v4 = vld [vmem:[#allocation7 + $0x10] sm:$0xff]  ;;  %vm519_vm2 = vcmask 130048   ;;  %s764_s7 = sshll.u32 %s1118_s24, 4  ;;  %s380_s11 = scalar_lea.vmem [#allocation11], %s1303_s2 }
  0x3e   : > { %v427_v5 = vld [vmem:[#allocation8 + $0x20] sm:$0xff]  ;;  %412 = vmatpush.msra.mxu0 %v390_v3  ;;  %765 = vmatpush.msra.mxu3 %v390_v3  ;;  %v388_v6 = vld [vmem:[#allocation7 + $0x8] sm:$0xff]  ;;  %v426_v7 = vld [vmem:[#allocation8 + $0x18] sm:$0xff]  ;;  %s587_s8 = scalar_lea.hbm %s1401_s6, %s764_s7  ;;  %s588_s17 = sshll.u32 %s380_s11, 4  ;;  %s589_s17 = int_to_ptr.vmem [resolvable:$true] %s588_s17 }
  0x3f   : > { %449 = vmatpush.msra.mxu1 %v429_v1  ;;  %v387_v8 = vld [vmem:[#allocation7] sm:$0xff]  ;;  %v425_v9 = vld [vmem:[#allocation8 + $0x10] sm:$0xff]  ;;  %v384_v11 = vld [vmem:[%s321_s18 + $0x8] sm:$0xff]  ;;  %s590_s14 = sshll.u32 %s587_s8, 4  ;;  %s574_s24 = scalar_lea.sflag [#allocation4], %s1300_s3  ;;  %s591_s14 = int_to_ptr.hbm [resolvable:$true] %s590_s14 }
  0x40   : > { %413 = vmatpush.msra.mxu0 %v389_v4  ;;  %766 = vmatpush.msra.mxu3 %v389_v4  ;;  %v383_v10 = vld [vmem:[%s321_s18] sm:$0xff]  ;;  %v424_v12 = vld [vmem:[#allocation8 + $0x8] sm:$0xff]  ;;  %v470_v16 = vld [vmem:[#allocation10 + $0x38] sm:$0xff]  ;;  %s1046_s4 = sshra.s32 %s591_s14, 4  ;;  %s1052_s10 = scalar_lea.hbm %s1401_s6, 32  ;;  %s1047_s4 = int_to_ptr.hbm [resolvable:$true] %s1046_s4 }
  0x41   : > { %450 = vmatpush.msra.mxu1 %v428_v2  ;;  %v423_v13 = vld [vmem:[#allocation8] sm:$0xff]  ;;  %v386_v15 = vld [vmem:[%s331_s9 + $0x8] sm:$0xff]  ;;  %v469_v17 = vld [vmem:[#allocation10 + $0x30] sm:$0xff]  ;;  %481 = vmatpush.msra.mxu2 %v470_v16  ;;  %s1048_s18 = scalar_lea.hbm %s1047_s4, 16  ;;  %p1053_p10 = scmp.lt.s32.totalorder %s1047_s4, %s1401_s6 }
  0x42   : > { %414 = vmatpush.msra.mxu0 %v388_v6  ;;  %767 = vmatpush.msra.mxu3 %v388_v6  ;;  %v385_v14 = vld [vmem:[%s331_s9] sm:$0xff]  ;;  %v468_v18 = vld [vmem:[#allocation10 + $0x28] sm:$0xff]  ;;  %v466_v21 = vld [vmem:[#allocation10 + $0x18] sm:$0xff]  ;;  %p1049_p1 = scmp.ne.s32.totalorder %s1047_s4, %s1048_s18  ;;  %p1054_p12 = scmp.lt.s32.totalorder %s1052_s10, %s1048_s18 }
  0x43   : > { %451 = vmatpush.msra.mxu1 %v427_v5  ;;  %482 = vmatpush.msra.mxu2 %v469_v17  ;;  %v467_v19 = vld [vmem:[#allocation10 + $0x20] sm:$0xff]  ;;  %v465_v22 = vld [vmem:[#allocation10 + $0x10] sm:$0xff]  ;;  %v464_v23 = vld [vmem:[#allocation10 + $0x8] sm:$0xff] }
  0x44   : > { %415 = vmatpush.msra.mxu0 %v387_v8  ;;  %768 = vmatpush.msra.mxu3 %v387_v8  ;;  %v463_v24 = vld [vmem:[#allocation10] sm:$0xff]  ;;  %p1050_p4 = pnand %p1049_p1, %p1270_p5  ;;  %p1055_p13 = por %p1054_p12, %p1053_p10 }
  0x45   : > { %452 = vmatpush.msra.mxu1 %v426_v7  ;;  %749 = vmatmul.msk.f32.vlgmr.msra.gmra.mxu0 %vm393_vm0, %v383_v10  ;;  %v871_v25 = vld [vmem:[%s1400_s5 + $0x1] ss:$0 sm:$0xff]  ;;  %v872_v28 = vld [vmem:[%s1400_s5] ss:$0 sm:$0xff]  ;;  %v873_v35 = vld [vmem:[%s1400_s5 + $0x2] ss:$0 sm:$0xff] }
  0x46   : > { %750 = vmatmul.msk.f32.vlgmr.msra.gmra.mxu3 %vm393_vm0, %v384_v11  ;;  %483 = vmatpush.msra.mxu2 %v468_v18  ;;  %p1051_p8 = pneg %p1050_p4 }
  0x47   : > { %453 = vmatpush.msra.mxu1 %v425_v9 }
  0x48   : > { %484 = vmatpush.msra.mxu2 %v467_v19  ;;  %p1056_p0 = pnand %p1055_p13, %p1051_p8 }
  0x49   : > { %454 = vmatpush.msra.mxu1 %v424_v12 }
  0x4a   : > { %485 = vmatpush.msra.mxu2 %v466_v21 }
  0x4b   : > { %455 = vmatpush.msra.mxu1 %v423_v13 }
  0x4c   : > { %751 = vmatmul.msk.f32.vlgmr.msra.gmra.mxu1 %vm433_vm1, %v385_v14  ;;  %486 = vmatpush.msra.mxu2 %v465_v22 }
  0x4e   : > { %487 = vmatpush.msra.mxu2 %v464_v23 }
  0x50   : > { %488 = vmatpush.msra.mxu2 %v463_v24 }
  0x51   : > { %753 = vmatmul.msk.f32.vlgmr.msra.gmra.mxu2 %vm433_vm1, %v385_v14 }
  0x54   : > { %752 = vmatmul.msk.f32.gmra.mxu1 %vm433_vm1, %v386_v15 }
  0x59   : > { %754 = vmatmul.msk.f32.gmra.mxu2 %vm433_vm1, %v386_v15 }
  0xc2   : > { %v417_v29 = vpop.f32.mrf.mxu0 }
  0xc3   : > { %v418_v31 = vadd.f32 %v872_v28, %v417_v29 }
  0xc9   : > { %v457_v20 = vpop.f32.mrf.mxu1  ;;  %v420_v32 = vpop.f32.mrf.mxu3 }
  0xca   : > { %v458_v30 = vadd.f32 %v871_v25, %v457_v20  ;;  %v421_v33 = vadd.f32 %v872_v28, %v420_v32 }
  0xd1   : > { %v460_v26 = vpop.f32.mrf.mxu1 }
  0xd2   : > { %v461_v27 = vadd.f32 %v871_v25, %v460_v26 }
  0xd4   : > { %510 = vmatpush.xpose.msrb.mxu3 %v461_v27  ;;  %v490_v34 = vpop.f32.mrf.mxu2 }
  0xd5   : > { %v491_v39 = vadd.f32 %v873_v35, %v490_v34 }
  0xd8   : > { %511 = vmatpush.xpose.msrb.mxu3 %v458_v30 }
  0xdb   : > { %512 = vmatmul.f32.vlgmr.msrb.gmra.mxu3 %v418_v31 }
  0xdc   : > { %v493_v37 = vpop.f32.mrf.mxu2 }
  0xdd   : > { %v494_v40 = vadd.f32 %v873_v35, %v493_v37 }
  0xdf   : > { %558 = vmatpush.msrb.mxu0 %v494_v40 }
  0xe1   : > { %559 = vmatpush.msrb.mxu0 %v491_v39 }
  0xe3   : > { %515 = vmatmul.f32.gmra.mxu3 %v421_v33 }
 0x15e   : > { %v513_v36 = vpop.f32.mrf.mxu3 }
 0x15f   : > { %v520_v38 = vsel %vm519_vm2, %v513_v36, -inf }
 0x160   : > { %521 = vmax.xlane.f32.xlu0 %v520_v38 }
 0x166   : > { %v516_v41 = vpop.f32.mrf.mxu3 }
 0x167   : > { %v523_v42 = vsel %vm519_vm2, %v516_v41, -inf }
 0x168   : > { %524 = vmax.xlane.f32.xlu0 %v523_v42 }
 0x1d3   : > { %v522_v43 = vpop.xlane.xlu0 %521 }
 0x1d4   : > { %v526_v44 = vsub.f32 %v513_v36, %v522_v43 }
 0x1d6   : > { %v528_v45 = vmul.f32 1.442695, %v526_v44 }
 0x1d8   : > { %874 = vpow2.f32 %v528_v45 }
 0x1db   : > { %v525_v46 = vpop.xlane.xlu0 %524 }
 0x1dc   : > { %v527_v47 = vsub.f32 %v516_v41, %v525_v46 }
 0x1de   : > { %v875_v48 = vpop.eup %874  ;;  %v530_v49 = vmul.f32 1.442695, %v527_v47 }
 0x1df   : > { %755 = vmatmul.msk.f32.vlgmr.msrb.gmra.mxu0 %vm519_vm2, %v875_v48  ;;  %v532_v50 = vsel %vm519_vm2, %v875_v48, 0.0 }
 0x1e0   : > { %876 = vpow2.f32 %v530_v49  ;;  %533 = vadd.xlane.f32.xlu1 %v532_v50 }
 0x1e6   : > { %v877_v51 = vpop.eup %876 }
 0x1e7   : > { %756 = vmatmul.msk.f32.gmra.mxu0 %vm519_vm2, %v877_v51  ;;  %v535_v52 = vsel %vm519_vm2, %v877_v51, 0.0 }
 0x1e8   : > { %536 = vadd.xlane.f32.xlu1 %v535_v52 }
 0x253   : > { %v534_v53 = vpop.xlane.xlu1 %533 }
 0x254   : > { %878 = vrcp.f32 %v534_v53 }
 0x25a   : > { %v879_v55 = vpop.eup %878 }
 0x25b   : > { %v537_v54 = vpop.xlane.xlu1 %536 }
 0x25c   : > { %v561_v56 = vpop.f32.mrf.mxu0  ;;  %880 = vrcp.f32 %v537_v54 }
 0x25d   : > { %v569_v57 = vmul.f32 %v879_v55, %v561_v56 }
 0x25f   : > { %571 = vst.msk [vmem:[%s380_s11] sm:$0xff] %vm393_vm0, %v569_v57 }
 0x262   : > { %v881_v58 = vpop.eup %880 }
 0x264   : > { %v564_v59 = vpop.f32.mrf.mxu0 }
 0x265   : > { %v570_v60 = vmul.f32 %v881_v58, %v564_v59 }
 0x267   : > { %572 = vst.msk [vmem:[%s380_s11 + $0x8] sm:$0xff] %vm393_vm0, %v570_v60 }
 0x268   : > { %1059 = shalt.err (!%p1056_p0)
}
 0x269   : > { %s1133_s3 = smov 128   ;;  %s1134_s29 = smov 8  }
 0x26a   : > { %785 = dma.vmem_to_hbm [thread:$0]  (%p1270_p5), %s589_s17, 256, %s591_s14, %s574_s24, %s1133_s3, %s1133_s3, %s1134_s29  }
 0x26b PF: > { %s605_s15 = sand.u32 1, %s1106_s21   ;;  %p805_p3 = pnand %p735_p11, %p1215_p6 }
 0x26c   : > { %s606_s19 = scalar_lea.sflag [#allocation4], %s605_s15 }
 0x26d   : > { %p806_p7 = pneg %p805_p3 }
 0x26f   : > { %1101 = dma.done.wait (%p806_p7), %s606_s19, 256  }
 0x270   : > { %1103 = vsyncadd (%p806_p7), %s606_s19, 4294967040  ;;  %s26_s26 = sadd.s32 1, %s1126_s26   ;;  %s1425_s20 = sld [smem:[#allocation19_spill]] }
 0x271   : > { %p23_p9 = scmp.ge.s32.totalorder %s26_s26, 4   ;;  %s1426_s24 = sld [smem:[#allocation17_spill]] }
 0x272   : > { %s1427_s25 = sld [smem:[#allocation18_spill]]  ;;  %s1428_s21 = smov %s1110_s22 }
 0x273   : > { %s1429_s22 = smov %s1114_s23  ;;  %25 = sbr.rel (!%p23_p9) target bundleno = 13 (0xd), region = 114 }
 0x276   : > { %s1430_s23 = smov %s1425_s20 }
 0x278   :  { %612 = vsyncpa [#allocation3], 1 }
 0x279   :  { %614 = vsyncpa [#allocation3 + $0x1], 1 }
 0x27a   :  { %615 = vsyncpa [#allocation6], 1 }
 0x27b   :  { %617 = vsyncpa [#allocation6 + $0x1], 1 }
 0x27c   :  { %618 = vsyncpa [#allocation9], 1 }
 0x27d   :  { %619 = vsyncpa [#allocation4], 1 }
 0x27e   :  { %621 = vsyncpa [#allocation4 + $0x1], 1 }

</bundles_post_ra>
